<compile_context>
chip_gen: v5e
topology: v5e:2x2
jax: 0.10.0
libtpu: 0.0.40
codegen_flags: <defaults>
</compile_context>

<pallas_src>
import jax
import jax.numpy as jnp
from jax.experimental import pallas as pl
from jax.experimental.pallas import tpu as pltpu


def _round_up(v, m):
    return (v + m - 1) // m * m


def _residual_linear_kernel(x_ref, w_ref, b_ref, o_ref):
    # x_ref: (TM, Dp) row tile; w_ref: (Dp, Dp) resident weight; b_ref: (1, Dp).
    x = x_ref[...]
    # Native (e.g. bf16) operands straight into the MXU, f32 accumulation.
    acc = jnp.dot(x, w_ref[...], preferred_element_type=jnp.float32)
    acc = acc + b_ref[...].astype(jnp.float32)
    acc = acc + x.astype(jnp.float32)          # Residual.forward: fn(x) + x
    o_ref[...] = acc.astype(o_ref.dtype)


def residual_linear(x, w, b, *, block_m=512):
    """Computes Linear(x) + x with bias + residual fused into the Pallas kernel.

    x: (B, N, D), w: (D, D), b: (D,).  Output has x's shape and dtype.
    """
    B, N, D = x.shape
    M = B * N

    # Lane-dense padding of the hidden dim only (critical when D % 128 != 0).
    Dp = _round_up(D, 128)

    # Row tiling: tm is always a multiple of 8 (sublane rule).  No padding of
    # M — the ragged last block is masked by Pallas.  For moderate M force at
    # least two grid points so the parallel axis can shard across v7x's 2 TCs.
    n_blocks = pl.cdiv(M, block_m)
    if n_blocks == 1 and M >= 256:
        n_blocks = 2
    tm = _round_up(pl.cdiv(M, n_blocks), 8)
    grid_m = pl.cdiv(M, tm)

    x2 = x.reshape(M, D)
    if Dp != D:
        # Zero padding keeps the result exact: padded rows of w are zero, so
        # padded x columns cannot contaminate valid outputs.
        x2 = jnp.pad(x2, ((0, 0), (0, Dp - D)))
        wp = jnp.pad(w, ((0, Dp - D), (0, Dp - D)))
        bp = jnp.pad(b, (0, Dp - D))
    else:
        wp, bp = w, b
    bp = bp.reshape(1, Dp)

    x_sz = x.dtype.itemsize
    w_sz = wp.dtype.itemsize

    cost = pl.CostEstimate(
        flops=2 * M * Dp * Dp + 2 * M * Dp,          # matmul + bias + residual
        transcendentals=0,
        bytes_accessed=2 * M * Dp * x_sz + Dp * Dp * w_sz + Dp * w_sz,
    )

    x_buffers = 3        # deeper input pipeline: DMA stays ahead of short compute
    out_buffers = 2

    def _build(use_pipeline_mode):
        if use_pipeline_mode:
            x_spec = pl.BlockSpec((tm, Dp), lambda i: (i, 0),
                                  pipeline_mode=pl.Buffered(x_buffers))
            # Constant index_map -> fetched once; single buffer is enough.
            w_spec = pl.BlockSpec((Dp, Dp), lambda i: (0, 0),
                                  pipeline_mode=pl.Buffered(1))
            b_spec = pl.BlockSpec((1, Dp), lambda i: (0, 0),
                                  pipeline_mode=pl.Buffered(1))
            w_bufs, xb = 1, x_buffers
        else:
            x_spec = pl.BlockSpec((tm, Dp), lambda i: (i, 0))
            w_spec = pl.BlockSpec((Dp, Dp), lambda i: (0, 0))
            b_spec = pl.BlockSpec((1, Dp), lambda i: (0, 0))
            w_bufs, xb = 2, 2

        # Explicit VMEM budget from the tile math (+ slack for f32 acc /
        # residual temporaries and Mosaic internal scratch).
        vmem_need = (xb * tm * Dp * x_sz                 # streamed x tiles
                     + out_buffers * tm * Dp * x_sz      # streamed out tiles
                     + w_bufs * Dp * Dp * w_sz           # resident weight
                     + w_bufs * 8 * Dp * w_sz            # bias (sublane-padded)
                     + 2 * tm * Dp * 4)                  # f32 acc + x upcast
        vmem_limit = max(16 << 20, min(int(vmem_need * 1.25) + (2 << 20), 128 << 20))

        return pl.pallas_call(
            _residual_linear_kernel,
            out_shape=jax.ShapeDtypeStruct((M, Dp), x.dtype),
            grid_spec=pltpu.PrefetchScalarGridSpec(
                num_scalar_prefetch=0,
                grid=(grid_m,),
                in_specs=[x_spec, w_spec, b_spec],
                out_specs=pl.BlockSpec((tm, Dp), lambda i: (i, 0)),
            ),
            compiler_params=pltpu.CompilerParams(
                dimension_semantics=("parallel",),
                vmem_limit_bytes=vmem_limit,
            ),
            cost_estimate=cost,
        )

    try:
        out = _build(True)(x2, wp, bp)
    except Exception:
        # pipeline_mode / pl.Buffered unavailable in this jax build: fall back
        # to default double buffering (identical semantics, slightly more VMEM).
        out = _build(False)(x2, wp, bp)

    if Dp != D:
        out = out[:, :D]
    return out.reshape(B, N, D)


if __name__ == "__main__":
    B, N, D = 2, 16, 32

    key = jax.random.PRNGKey(0)
    kx, kw, kb = jax.random.split(key, 3)

    x = jax.random.normal(kx, (B, N, D), dtype=jnp.float32)
    # Deterministic parameters for the wrapped fn (Linear(D, D)).
    w = jax.random.normal(kw, (D, D), dtype=jnp.float32) * 0.02
    b = jax.random.normal(kb, (D,), dtype=jnp.float32) * 0.02

    ref = jnp.einsum("bnd,de->bne", x, w) + b + x

    # f32 path
    out = residual_linear(x, w, b)
    jax.block_until_ready(out)
    assert out.shape == x.shape and out.dtype == x.dtype
    assert jnp.allclose(out, ref, atol=1e-4, rtol=1e-4), "f32 mismatch vs reference"

    # bf16 path: operands hit the MXU natively (preferred on v5e/v7x),
    # f32 accumulation inside the kernel.
    out_bf = residual_linear(
        x.astype(jnp.bfloat16), w.astype(jnp.bfloat16), b.astype(jnp.bfloat16)
    )
    jax.block_until_ready(out_bf)
    assert out_bf.dtype == jnp.bfloat16
    assert jnp.allclose(out_bf.astype(jnp.float32), ref, atol=5e-2, rtol=5e-2), \
        "bf16 mismatch vs reference"

    print("KERNEL_OK")
</pallas_src>

<mosaic_0001>
module attributes {stable_mosaic.version = 11 : i64} {
  func.func @_residual_linear_kernel(%arg0: i32, %arg1: memref<32x128xf32, #tpu.memory_space<vmem>>, %arg2: memref<128x128xf32, #tpu.memory_space<vmem>>, %arg3: memref<1x128xf32, #tpu.memory_space<vmem>>, %arg4: memref<32x128xf32, #tpu.memory_space<vmem>>) attributes {dimension_semantics = [#tpu.dimension_semantics<parallel>], iteration_bounds = array<i64: 1>, scalar_prefetch = 0 : i64, scratch_operands = 0 : i64, tpu.core_type = #tpu.core_type<tc>, window_params = [{transform_indices = @transform_0, window_bounds = array<i64: 32, 128>}, {pipeline_mode = #tpu.pipeline_mode<synchronous>, transform_indices = @transform_1, window_bounds = array<i64: 128, 128>}, {pipeline_mode = #tpu.pipeline_mode<synchronous>, transform_indices = @transform_2, window_bounds = array<i64: 1, 128>}, {transform_indices = @transform_3, window_bounds = array<i64: 32, 128>}]} {
    %c0 = arith.constant 0 : index
    %c0_0 = arith.constant 0 : index
    %0 = vector.load %arg1[%c0, %c0_0] : memref<32x128xf32, #tpu.memory_space<vmem>>, vector<32x128xf32>
    %c0_1 = arith.constant 0 : index
    %c0_2 = arith.constant 0 : index
    %1 = vector.load %arg2[%c0_1, %c0_2] : memref<128x128xf32, #tpu.memory_space<vmem>>, vector<128x128xf32>
    %cst = arith.constant dense<0.000000e+00> : vector<32x128xf32>
    %2 = tpu.matmul %0, %1, %cst {dimension_numbers = #tpu.dot_dimension_numbers<[1], [0], [0], [1], [0, 0, 1, 1], [], []>} : vector<32x128xf32>, vector<128x128xf32>, vector<32x128xf32> -> vector<32x128xf32>
    %c0_3 = arith.constant 0 : index
    %c0_4 = arith.constant 0 : index
    %3 = vector.load %arg3[%c0_3, %c0_4] : memref<1x128xf32, #tpu.memory_space<vmem>>, vector<1x128xf32>
    %4 = vector.broadcast %3 : vector<1x128xf32> to vector<32x128xf32>
    %5 = arith.addf %2, %4 : vector<32x128xf32>
    %6 = arith.addf %5, %0 : vector<32x128xf32>
    %c0_5 = arith.constant 0 : index
    %c0_6 = arith.constant 0 : index
    %7 = vector.load %arg4[%c0_5, %c0_6] : memref<32x128xf32, #tpu.memory_space<vmem>>, vector<32x128xf32>
    tpu.vector_store %arg4[%c0_5, %c0_6], %6 {strides = array<i32>} : memref<32x128xf32, #tpu.memory_space<vmem>>, vector<32x128xf32>,
    return
  }
  func.func @transform_0(%arg0: i32) -> (i32, i32) {
    %c0_i32 = arith.constant 0 : i32
    %c0_i32_0 = arith.constant 0 : i32
    return %arg0, %c0_i32 : i32, i32
  }
  func.func @transform_1(%arg0: i32) -> (i32, i32) {
    %c0_i32 = arith.constant 0 : i32
    %c0_i32_0 = arith.constant 0 : i32
    %c0_i32_1 = arith.constant 0 : i32
    return %c0_i32, %c0_i32_0 : i32, i32
  }
  func.func @transform_2(%arg0: i32) -> (i32, i32) {
    %c0_i32 = arith.constant 0 : i32
    %c0_i32_0 = arith.constant 0 : i32
    %c0_i32_1 = arith.constant 0 : i32
    return %c0_i32, %c0_i32_0 : i32, i32
  }
  func.func @transform_3(%arg0: i32) -> (i32, i32) {
    %c0_i32 = arith.constant 0 : i32
    %c0_i32_0 = arith.constant 0 : i32
    return %arg0, %c0_i32 : i32, i32
  }
}

</mosaic_0001>

<bundles_post_ra>
// kernel: tpu_custom_call.1
= control target key start
LH: loop header
LB: loop body
LE: loop exit
PB: predicated region body
PF: predicated region fallthrough
CT: control target
= control target key end

     0   :  { %8 = vsyncpa [#allocation3], 0  ;;  %s306_s0 = inlined_call_operand.hbm [shape: f32[32,128], index: 0, kind: input, shape index: {}]   ;;  %s307_s1 = inlined_call_operand.hbm [shape: f32[128,128], index: 1, kind: input, shape index: {}]   ;;  %s308_s2 = inlined_call_operand.vmem [shape: f32[1,128], index: 2, kind: input, shape index: {}]   ;;  %s309_s3 = inlined_call_operand.hbm [shape: f32[32,128], index: 3, kind: output, shape index: {}]  }
   0x1   :  { %9 = vsyncpa [#allocation6], 0 }
   0x2   :  { %10 = vsyncpa [#allocation4], 0  ;;  %s15_s14 = sshll.u32 %s306_s0, 4  ;;  %s260_s15 = smov [#allocation2]   ;;  %s16_s14 = int_to_ptr.hbm [resolvable:$true] %s15_s14 }
   0x3   :  { %s17_s16 = sshll.u32 %s260_s15, 4  ;;  %s28_s19 = sshll.u32 %s307_s1, 4  ;;  %s18_s16 = int_to_ptr.vmem [resolvable:$true] %s17_s16  ;;  %s29_s19 = int_to_ptr.hbm [resolvable:$true] %s28_s19 }
   0x4   :  { %s261_s20 = smov 128   ;;  %s262_s21 = smov 8  }
   0x5   :  { %23 = dma.hbm_to_vmem [thread:$0]  %s16_s14, 512, %s18_s16, [#allocation3], %s261_s20, %s261_s20, %s262_s21  }
   0x6   :  { %s263_s22 = smov [#allocation5]  }
   0x7   :  { %s30_s23 = sshll.u32 %s263_s22, 4  ;;  %s31_s23 = int_to_ptr.vmem [resolvable:$true] %s30_s23 }
   0x8   :  { %36 = dma.hbm_to_vmem [thread:$0]  %s29_s19, 2048, %s31_s23, [#allocation6], %s261_s20, %s261_s20, %s262_s21  }
   0x9   :  { %254 = dma.done.wait [#allocation3], 512  }
   0xa   :  { %255 = vsyncadd [#allocation3], 4294966784 }
   0xb   :  { %256 = dma.done.wait [#allocation6], 2048  }
   0xc   :  { %257 = vsyncadd [#allocation6], 4294965248  ;;  %v66_v0 = vld [vmem:[#allocation5 + $0x78] sm:$0xff]  ;;  %v65_v1 = vld [vmem:[#allocation5 + $0x70] sm:$0xff]  ;;  %s264_s24 = smov [#allocation7]   ;;  %s114_s28 = sshll.u32 %s309_s3, 4  ;;  %s115_s28 = int_to_ptr.hbm [resolvable:$true] %s114_s28 }
   0xd   :  { %129 = vmatpush.msra.mxu2 %v66_v0  ;;  %130 = vmatpush.msra.mxu3 %v66_v0  ;;  %v64_v2 = vld [vmem:[#allocation5 + $0x68] sm:$0xff]  ;;  %v63_v3 = vld [vmem:[#allocation5 + $0x60] sm:$0xff]  ;;  %v62_v4 = vld [vmem:[#allocation5 + $0x58] sm:$0xff]  ;;  %s112_s25 = sshll.u32 %s264_s24, 4  ;;  %s113_s25 = int_to_ptr.vmem [resolvable:$true] %s112_s25 }
   0xe   :  { %71 = vmatpush.msra.mxu0 %v66_v0  ;;  %128 = vmatpush.msra.mxu1 %v66_v0  ;;  %v61_v5 = vld [vmem:[#allocation5 + $0x50] sm:$0xff]  ;;  %v60_v6 = vld [vmem:[#allocation5 + $0x48] sm:$0xff]  ;;  %v59_v7 = vld [vmem:[#allocation5 + $0x40] sm:$0xff] }
   0xf   :  { %132 = vmatpush.msra.mxu2 %v65_v1  ;;  %133 = vmatpush.msra.mxu3 %v65_v1  ;;  %v58_v8 = vld [vmem:[#allocation5 + $0x38] sm:$0xff]  ;;  %v57_v9 = vld [vmem:[#allocation5 + $0x30] sm:$0xff]  ;;  %v56_v10 = vld [vmem:[#allocation5 + $0x28] sm:$0xff] }
  0x10   :  { %72 = vmatpush.msra.mxu0 %v65_v1  ;;  %131 = vmatpush.msra.mxu1 %v65_v1  ;;  %v55_v11 = vld [vmem:[#allocation5 + $0x20] sm:$0xff]  ;;  %v54_v12 = vld [vmem:[#allocation5 + $0x18] sm:$0xff]  ;;  %v53_v13 = vld [vmem:[#allocation5 + $0x10] sm:$0xff] }
  0x11   :  { %135 = vmatpush.msra.mxu2 %v64_v2  ;;  %136 = vmatpush.msra.mxu3 %v64_v2  ;;  %v52_v14 = vld [vmem:[#allocation5 + $0x8] sm:$0xff]  ;;  %v51_v15 = vld [vmem:[#allocation5] sm:$0xff]  ;;  %v49_v16 = vld [vmem:[#allocation2 + $0x10] sm:$0xff] }
  0x12   :  { %73 = vmatpush.msra.mxu0 %v64_v2  ;;  %134 = vmatpush.msra.mxu1 %v64_v2  ;;  %v50_v17 = vld [vmem:[#allocation2 + $0x18] sm:$0xff]  ;;  %v47_v18 = vld [vmem:[#allocation2] sm:$0xff]  ;;  %v48_v19 = vld [vmem:[#allocation2 + $0x8] sm:$0xff] }
  0x13   :  { %138 = vmatpush.msra.mxu2 %v63_v3  ;;  %139 = vmatpush.msra.mxu3 %v63_v3  ;;  %v181_v20 = vld [vmem:[%s308_s2] ss:$0 sm:$0xff] }
  0x14   :  { %74 = vmatpush.msra.mxu0 %v63_v3  ;;  %137 = vmatpush.msra.mxu1 %v63_v3 }
  0x15   :  { %141 = vmatpush.msra.mxu2 %v62_v4  ;;  %142 = vmatpush.msra.mxu3 %v62_v4 }
  0x16   :  { %75 = vmatpush.msra.mxu0 %v62_v4  ;;  %140 = vmatpush.msra.mxu1 %v62_v4 }
  0x17   :  { %144 = vmatpush.msra.mxu2 %v61_v5  ;;  %145 = vmatpush.msra.mxu3 %v61_v5 }
  0x18   :  { %76 = vmatpush.msra.mxu0 %v61_v5  ;;  %143 = vmatpush.msra.mxu1 %v61_v5 }
  0x19   :  { %147 = vmatpush.msra.mxu2 %v60_v6  ;;  %148 = vmatpush.msra.mxu3 %v60_v6 }
  0x1a   :  { %77 = vmatpush.msra.mxu0 %v60_v6  ;;  %146 = vmatpush.msra.mxu1 %v60_v6 }
  0x1b   :  { %150 = vmatpush.msra.mxu2 %v59_v7  ;;  %151 = vmatpush.msra.mxu3 %v59_v7 }
  0x1c   :  { %78 = vmatpush.msra.mxu0 %v59_v7  ;;  %149 = vmatpush.msra.mxu1 %v59_v7 }
  0x1d   :  { %153 = vmatpush.msra.mxu2 %v58_v8  ;;  %154 = vmatpush.msra.mxu3 %v58_v8 }
  0x1e   :  { %79 = vmatpush.msra.mxu0 %v58_v8  ;;  %152 = vmatpush.msra.mxu1 %v58_v8 }
  0x1f   :  { %156 = vmatpush.msra.mxu2 %v57_v9  ;;  %157 = vmatpush.msra.mxu3 %v57_v9 }
  0x20   :  { %80 = vmatpush.msra.mxu0 %v57_v9  ;;  %155 = vmatpush.msra.mxu1 %v57_v9 }
  0x21   :  { %159 = vmatpush.msra.mxu2 %v56_v10  ;;  %160 = vmatpush.msra.mxu3 %v56_v10 }
  0x22   :  { %81 = vmatpush.msra.mxu0 %v56_v10  ;;  %158 = vmatpush.msra.mxu1 %v56_v10 }
  0x23   :  { %162 = vmatpush.msra.mxu2 %v55_v11  ;;  %163 = vmatpush.msra.mxu3 %v55_v11 }
  0x24   :  { %82 = vmatpush.msra.mxu0 %v55_v11  ;;  %161 = vmatpush.msra.mxu1 %v55_v11 }
  0x25   :  { %165 = vmatpush.msra.mxu2 %v54_v12  ;;  %166 = vmatpush.msra.mxu3 %v54_v12 }
  0x26   :  { %83 = vmatpush.msra.mxu0 %v54_v12  ;;  %164 = vmatpush.msra.mxu1 %v54_v12 }
  0x27   :  { %168 = vmatpush.msra.mxu2 %v53_v13  ;;  %169 = vmatpush.msra.mxu3 %v53_v13 }
  0x28   :  { %84 = vmatpush.msra.mxu0 %v53_v13  ;;  %167 = vmatpush.msra.mxu1 %v53_v13 }
  0x29   :  { %171 = vmatpush.msra.mxu2 %v52_v14  ;;  %172 = vmatpush.msra.mxu3 %v52_v14 }
  0x2a   :  { %85 = vmatpush.msra.mxu0 %v52_v14  ;;  %170 = vmatpush.msra.mxu1 %v52_v14 }
  0x2b   :  { %174 = vmatpush.msra.mxu2 %v51_v15  ;;  %175 = vmatpush.msra.mxu3 %v51_v15 }
  0x2c   :  { %93 = vmatmul.f32.vlgmr.msra.gmra.mxu2 %v49_v16  ;;  %96 = vmatmul.f32.vlgmr.msra.gmra.mxu3 %v50_v17 }
  0x2d   :  { %86 = vmatpush.msra.mxu0 %v51_v15  ;;  %173 = vmatpush.msra.mxu1 %v51_v15 }
  0x2e   :  { %87 = vmatmul.f32.vlgmr.msra.gmra.mxu0 %v47_v18  ;;  %90 = vmatmul.f32.vlgmr.msra.gmra.mxu1 %v48_v19 }
  0xab   :  { %v88_v21 = vpop.f32.mrf.mxu0  ;;  %v91_v22 = vpop.f32.mrf.mxu1 }
  0xac   :  { %v89_v23 = vadd.f32 %v181_v20, %v88_v21  ;;  %v92_v24 = vadd.f32 %v181_v20, %v91_v22 }
  0xae   :  { %v100_v25 = vadd.f32 %v89_v23, %v47_v18  ;;  %v101_v26 = vadd.f32 %v92_v24, %v48_v19 }
  0xaf   :  { %v94_v27 = vpop.f32.mrf.mxu2  ;;  %v97_v28 = vpop.f32.mrf.mxu3 }
  0xb0   :  { %104 = vst [vmem:[#allocation7] sm:$0xff] %v100_v25  ;;  %v95_v29 = vadd.f32 %v181_v20, %v94_v27  ;;  %v98_v30 = vadd.f32 %v181_v20, %v97_v28 }
  0xb1   :  { %105 = vst [vmem:[#allocation7 + $0x8] sm:$0xff] %v101_v26 }
  0xb2   :  { %v102_v31 = vadd.f32 %v95_v29, %v49_v16  ;;  %v103_v32 = vadd.f32 %v98_v30, %v50_v17 }
  0xb4   :  { %106 = vst [vmem:[#allocation7 + $0x10] sm:$0xff] %v102_v31 }
  0xb5   :  { %107 = vst [vmem:[#allocation7 + $0x18] sm:$0xff] %v103_v32 }
  0xb6   :  { %120 = dma.vmem_to_hbm [thread:$0]  %s113_s25, 512, %s115_s28, [#allocation4], %s261_s20, %s261_s20, %s262_s21  }
  0xb7   :  { %258 = dma.done.wait [#allocation4], 512  }
  0xb8   :  { %259 = vsyncadd [#allocation4], 4294966784 }
  0xb9   :  { %125 = vsyncpa [#allocation3], 1 }
  0xba   :  { %126 = vsyncpa [#allocation6], 1 }
  0xbb   :  { %127 = vsyncpa [#allocation4], 1 }

</bundles_post_ra>
